<compile_context>
chip_gen: v5e
topology: v5e:2x2
jax: 0.10.0
libtpu: 0.0.40
codegen_flags: <defaults>
</compile_context>

<pallas_src>
import jax
import jax.numpy as jnp
from jax import lax
from jax.experimental import pallas as pl
from jax.experimental.pallas import tpu as pltpu


# ----------------------------- Pallas kernel ------------------------------ #
def _gru_kernel(gi_ref, whh_ref, bhn_ref, fcw_ref, fcb_ref, out_ref):
    """Serial GRU recurrence + final Linear, everything resident in VMEM/vregs.

    gi_ref : (T, B, 3H)  precomputed input-side gate terms, gate order (r,z,n);
                         b_ir+b_hr and b_iz+b_hz pre-folded into the r/z slabs,
                         b_in pre-folded into the n slab.
    whh_ref: (H, 3H)     fused hidden->gate weights [W_hr | W_hz | W_hn].
    bhn_ref: (1, H)      hidden bias of the n gate (must stay inside r*(.)).
    fcw_ref: (H, O)      final linear weight (transposed).
    fcb_ref: (1, O)      final linear bias.
    out_ref: (B, O)
    """
    T, B, G = gi_ref.shape
    H = G // 3

    # Hoist loop-invariant loads / broadcasts out of the recurrence
    # (JAX does not CSE broadcast_in_dim inside the unrolled loop body).
    whh = whh_ref[...]                                   # (H, 3H) in vregs
    b_hn = jnp.broadcast_to(bhn_ref[...], (B, H))        # (B, H)

    def step(t, h):
        gi_t = gi_ref[t]                                 # (B, 3H)
        # Single fused MXU dot per step: one push + one result drain keeps the
        # serial h->h critical path as short as possible.
        gh = jnp.dot(h, whh, preferred_element_type=jnp.float32)   # (B, 3H)

        rz = jax.nn.sigmoid(gi_t[:, :2 * H] + gh[:, :2 * H])       # (B, 2H) EUP
        r = rz[:, :H]
        z = rz[:, H:]
        n = jnp.tanh(gi_t[:, 2 * H:] + r * (gh[:, 2 * H:] + b_hn))
        return n + z * (h - n)        # == (1-z)*n + z*h

    # h lives in the loop carry (vregs); T is static and small -> full unroll.
    h0 = jnp.zeros((B, H), jnp.float32)
    h = lax.fori_loop(0, T, step, h0, unroll=True)

    # final fc: (B, H) @ (H, O) + (1, O)
    out_ref[...] = (jnp.dot(h, fcw_ref[...], preferred_element_type=jnp.float32)
                    + fcb_ref[...])


# ------------------------------- wrapper ----------------------------------- #
def gru_forward(inp, params):
    """Mirrors GRU.forward(): returns (fc(h_T), None).

    inp: (B, 3, T, 1) float32  (channel 0 = x, channel 2 = mask; delta unused)
    """
    wih, whh, bih, bhh, fcw, fcb = params
    B, _, T, _ = inp.shape
    H = whh.shape[1]
    O = fcw.shape[1]

    x = inp[:, 0, :, 0]                              # (B, T)
    x = jnp.where(jnp.isnan(x), -1.0, x)             # x[x != x] = -1
    m = inp[:, 2, :, 0]                              # (B, T)
    xm = jnp.stack([x.T, m.T], axis=-1)              # (T, B, 2) time-major

    # Hoist the input-side gate matmuls out of the serial recurrence
    # (they do not depend on h) and pre-merge biases:
    #   r slab gets b_ir + b_hr, z slab gets b_iz + b_hz, n slab gets b_in.
    wih_cat = jnp.concatenate([wih[0], wih[1], wih[2]], axis=1)        # (2, 3H)
    bi_cat = jnp.concatenate([bih[0] + bhh[0],
                              bih[1] + bhh[1],
                              bih[2]], axis=1)                         # (1, 3H)
    gi = (jnp.einsum('tbi,ih->tbh', xm, wih_cat,
                     preferred_element_type=jnp.float32)
          + bi_cat)                                                    # (T, B, 3H)

    # Fuse the three hidden matmuls into a single (H, 3H) weight.
    whh_cat = jnp.concatenate([whh[0], whh[1], whh[2]], axis=1)        # (H, 3H)
    bhn = bhh[2]                                                       # (1, H)

    # Advisory cost estimate so XLA schedules sensibly around the custom call.
    ce = pl.CostEstimate(
        flops=T * 2 * B * H * 3 * H + 2 * B * H * O,
        transcendentals=T * B * 3 * H,
        bytes_accessed=4 * (T * B * 3 * H + H * 3 * H + H + H * O + O + B * O),
    )

    # All operands are tiny (a few KiB) -> keep fully resident in VMEM,
    # no grid / no scratch needed.
    # TODO(synk): if T/B grow large, add a T grid axis with BlockSpec streaming
    # of gi (and a parallel B axis for v7x's 2 TensorCores).
    vmem = pl.BlockSpec(memory_space=pltpu.MemorySpace.VMEM)
    out = pl.pallas_call(
        _gru_kernel,
        out_shape=jax.ShapeDtypeStruct((B, O), jnp.float32),
        in_specs=[vmem] * 5,
        out_specs=vmem,
        cost_estimate=ce,
    )(gi, whh_cat, bhn, fcw, fcb)
    return out, None


# --------------------------- pure-JAX reference ----------------------------- #
def gru_ref(inp, params):
    wih, whh, bih, bhh, fcw, fcb = params
    B, _, T, _ = inp.shape
    H = whh.shape[1]
    x = inp[:, 0, :, 0]
    x = jnp.where(jnp.isnan(x), -1.0, x)
    m = inp[:, 2, :, 0]
    h = jnp.zeros((B, H), jnp.float32)
    for t in range(T):
        u = jnp.concatenate([x[:, t:t + 1], m[:, t:t + 1]], axis=1)
        r = jax.nn.sigmoid(u @ wih[0] + bih[0] + h @ whh[0] + bhh[0])
        z = jax.nn.sigmoid(u @ wih[1] + bih[1] + h @ whh[1] + bhh[1])
        n = jnp.tanh(u @ wih[2] + bih[2] + r * (h @ whh[2] + bhh[2]))
        h = (1.0 - z) * n + z * h
    return h @ fcw + fcb, None


# ------------------------------ param init --------------------------------- #
def init_params(key, input_size, gru_hidden_size, output_size):
    H = gru_hidden_size
    k_gru = 1.0 / jnp.sqrt(jnp.float32(H))            # nn.GRUCell default init
    k_fc = 1.0 / jnp.sqrt(jnp.float32(H))             # nn.Linear default init
    ks = jax.random.split(key, 6)
    wih = jax.random.uniform(ks[0], (3, 2 * input_size, H), jnp.float32, -k_gru, k_gru)
    whh = jax.random.uniform(ks[1], (3, H, H), jnp.float32, -k_gru, k_gru)
    bih = jax.random.uniform(ks[2], (3, 1, H), jnp.float32, -k_gru, k_gru)
    bhh = jax.random.uniform(ks[3], (3, 1, H), jnp.float32, -k_gru, k_gru)
    fcw = jax.random.uniform(ks[4], (H, output_size), jnp.float32, -k_fc, k_fc)
    fcb = jax.random.uniform(ks[5], (1, output_size), jnp.float32, -k_fc, k_fc)
    return (wih, whh, bih, bhh, fcw, fcb)


if __name__ == "__main__":
    # Small shapes consistent with the module: input_size=1 (forced by forward()),
    # batch=2, seq=8, gru_hidden=32, output=4.
    B, T = 2, 8
    INPUT_SIZE, HIDDEN, OUT = 1, 32, 4

    key = jax.random.PRNGKey(0)
    k_in, k_mask, k_par = jax.random.split(key, 3)

    x_chan = jax.random.normal(k_in, (B, T), jnp.float32)
    x_chan = x_chan.at[0, 3].set(jnp.nan)              # exercise the NaN -> -1 path
    delta_chan = jnp.zeros((B, T), jnp.float32)
    mask_chan = (jax.random.uniform(k_mask, (B, T)) > 0.3).astype(jnp.float32)
    inp = jnp.stack([x_chan, delta_chan, mask_chan], axis=1)[..., None]  # (B, 3, T, 1)

    params = init_params(k_par, INPUT_SIZE, HIDDEN, OUT)

    out, _ = jax.jit(gru_forward)(inp, params)
    out = jax.block_until_ready(out)

    ref, _ = gru_ref(inp, params)
    assert out.shape == (B, OUT)
    assert jnp.allclose(out, ref, rtol=1e-4, atol=1e-4), (out, ref)

    print("KERNEL_OK")
</pallas_src>

<mosaic_0001>
module attributes {stable_mosaic.version = 11 : i64} {
  func.func @_gru_kernel(%arg0: memref<8x2x96xf32, #tpu.memory_space<vmem>>, %arg1: memref<32x96xf32, #tpu.memory_space<vmem>>, %arg2: memref<1x32xf32, #tpu.memory_space<vmem>>, %arg3: memref<32x4xf32, #tpu.memory_space<vmem>>, %arg4: memref<1x4xf32, #tpu.memory_space<vmem>>, %arg5: memref<2x4xf32, #tpu.memory_space<vmem>>) attributes {dimension_semantics = [], scalar_prefetch = 0 : i64, scratch_operands = 0 : i64, tpu.core_type = #tpu.core_type<tc>} {
    %c0 = arith.constant 0 : index
    %c0_0 = arith.constant 0 : index
    %0 = vector.load %arg1[%c0, %c0_0] : memref<32x96xf32, #tpu.memory_space<vmem>>, vector<32x96xf32>
    %c0_1 = arith.constant 0 : index
    %c0_2 = arith.constant 0 : index
    %1 = vector.load %arg2[%c0_1, %c0_2] : memref<1x32xf32, #tpu.memory_space<vmem>>, vector<1x32xf32>
    %2 = vector.shape_cast %1 : vector<1x32xf32> to vector<1x32xf32>
    %3 = vector.broadcast %2 : vector<1x32xf32> to vector<2x32xf32>
    %cst = arith.constant 0.000000e+00 : f32
    %4 = vector.broadcast %cst : f32 to vector<2x32xf32>
    %c0_i32 = arith.constant 0 : i32
    %5 = arith.index_cast %c0_i32 : i32 to index
    %c0_3 = arith.constant 0 : index
    %c0_4 = arith.constant 0 : index
    %6 = vector.load %arg0[%5, %c0_3, %c0_4] : memref<8x2x96xf32, #tpu.memory_space<vmem>>, vector<1x2x96xf32>
    %7 = vector.shape_cast %6 : vector<1x2x96xf32> to vector<2x96xf32>
    %cst_5 = arith.constant dense<0.000000e+00> : vector<2x96xf32>
    %8 = tpu.matmul %4, %0, %cst_5 {dimension_numbers = #tpu.dot_dimension_numbers<[1], [0], [0], [1], [0, 0, 1, 1], [], []>} : vector<2x32xf32>, vector<32x96xf32>, vector<2x96xf32> -> vector<2x96xf32>
    %9 = vector.extract_strided_slice %7 {offsets = [0, 0], sizes = [2, 64], strides = [1, 1]} : vector<2x96xf32> to vector<2x64xf32>
    %10 = vector.extract_strided_slice %8 {offsets = [0, 0], sizes = [2, 64], strides = [1, 1]} : vector<2x96xf32> to vector<2x64xf32>
    %11 = arith.addf %9, %10 : vector<2x64xf32>
    %12 = arith.negf %11 : vector<2x64xf32>
    %13 = math.exp %12 : vector<2x64xf32>
    %cst_6 = arith.constant 1.000000e+00 : f32
    %14 = vector.broadcast %cst_6 : f32 to vector<2x64xf32>
    %15 = arith.addf %14, %13 : vector<2x64xf32>
    %16 = arith.divf %14, %15 : vector<2x64xf32>
    %17 = vector.extract_strided_slice %16 {offsets = [0, 0], sizes = [2, 32], strides = [1, 1]} : vector<2x64xf32> to vector<2x32xf32>
    %18 = vector.extract_strided_slice %16 {offsets = [0, 32], sizes = [2, 32], strides = [1, 1]} : vector<2x64xf32> to vector<2x32xf32>
    %19 = vector.extract_strided_slice %7 {offsets = [0, 64], sizes = [2, 32], strides = [1, 1]} : vector<2x96xf32> to vector<2x32xf32>
    %20 = vector.extract_strided_slice %8 {offsets = [0, 64], sizes = [2, 32], strides = [1, 1]} : vector<2x96xf32> to vector<2x32xf32>
    %21 = arith.addf %20, %3 : vector<2x32xf32>
    %22 = arith.mulf %17, %21 : vector<2x32xf32>
    %23 = arith.addf %19, %22 : vector<2x32xf32>
    %24 = math.tanh %23 : vector<2x32xf32>
    %25 = arith.subf %4, %24 : vector<2x32xf32>
    %26 = arith.mulf %18, %25 : vector<2x32xf32>
    %27 = arith.addf %24, %26 : vector<2x32xf32>
    %c1_i32 = arith.constant 1 : i32
    %28 = arith.index_cast %c1_i32 : i32 to index
    %c0_7 = arith.constant 0 : index
    %c0_8 = arith.constant 0 : index
    %29 = vector.load %arg0[%28, %c0_7, %c0_8] : memref<8x2x96xf32, #tpu.memory_space<vmem>>, vector<1x2x96xf32>
    %30 = vector.shape_cast %29 : vector<1x2x96xf32> to vector<2x96xf32>
    %cst_9 = arith.constant dense<0.000000e+00> : vector<2x96xf32>
    %31 = tpu.matmul %27, %0, %cst_9 {dimension_numbers = #tpu.dot_dimension_numbers<[1], [0], [0], [1], [0, 0, 1, 1], [], []>} : vector<2x32xf32>, vector<32x96xf32>, vector<2x96xf32> -> vector<2x96xf32>
    %32 = vector.extract_strided_slice %30 {offsets = [0, 0], sizes = [2, 64], strides = [1, 1]} : vector<2x96xf32> to vector<2x64xf32>
    %33 = vector.extract_strided_slice %31 {offsets = [0, 0], sizes = [2, 64], strides = [1, 1]} : vector<2x96xf32> to vector<2x64xf32>
    %34 = arith.addf %32, %33 : vector<2x64xf32>
    %35 = arith.negf %34 : vector<2x64xf32>
    %36 = math.exp %35 : vector<2x64xf32>
    %cst_10 = arith.constant 1.000000e+00 : f32
    %37 = vector.broadcast %cst_10 : f32 to vector<2x64xf32>
    %38 = arith.addf %37, %36 : vector<2x64xf32>
    %39 = arith.divf %37, %38 : vector<2x64xf32>
    %40 = vector.extract_strided_slice %39 {offsets = [0, 0], sizes = [2, 32], strides = [1, 1]} : vector<2x64xf32> to vector<2x32xf32>
    %41 = vector.extract_strided_slice %39 {offsets = [0, 32], sizes = [2, 32], strides = [1, 1]} : vector<2x64xf32> to vector<2x32xf32>
    %42 = vector.extract_strided_slice %30 {offsets = [0, 64], sizes = [2, 32], strides = [1, 1]} : vector<2x96xf32> to vector<2x32xf32>
    %43 = vector.extract_strided_slice %31 {offsets = [0, 64], sizes = [2, 32], strides = [1, 1]} : vector<2x96xf32> to vector<2x32xf32>
    %44 = arith.addf %43, %3 : vector<2x32xf32>
    %45 = arith.mulf %40, %44 : vector<2x32xf32>
    %46 = arith.addf %42, %45 : vector<2x32xf32>
    %47 = math.tanh %46 : vector<2x32xf32>
    %48 = arith.subf %27, %47 : vector<2x32xf32>
    %49 = arith.mulf %41, %48 : vector<2x32xf32>
    %50 = arith.addf %47, %49 : vector<2x32xf32>
    %c2_i32 = arith.constant 2 : i32
    %51 = arith.index_cast %c2_i32 : i32 to index
    %c0_11 = arith.constant 0 : index
    %c0_12 = arith.constant 0 : index
    %52 = vector.load %arg0[%51, %c0_11, %c0_12] : memref<8x2x96xf32, #tpu.memory_space<vmem>>, vector<1x2x96xf32>
    %53 = vector.shape_cast %52 : vector<1x2x96xf32> to vector<2x96xf32>
    %cst_13 = arith.constant dense<0.000000e+00> : vector<2x96xf32>
    %54 = tpu.matmul %50, %0, %cst_13 {dimension_numbers = #tpu.dot_dimension_numbers<[1], [0], [0], [1], [0, 0, 1, 1], [], []>} : vector<2x32xf32>, vector<32x96xf32>, vector<2x96xf32> -> vector<2x96xf32>
    %55 = vector.extract_strided_slice %53 {offsets = [0, 0], sizes = [2, 64], strides = [1, 1]} : vector<2x96xf32> to vector<2x64xf32>
    %56 = vector.extract_strided_slice %54 {offsets = [0, 0], sizes = [2, 64], strides = [1, 1]} : vector<2x96xf32> to vector<2x64xf32>
    %57 = arith.addf %55, %56 : vector<2x64xf32>
    %58 = arith.negf %57 : vector<2x64xf32>
    %59 = math.exp %58 : vector<2x64xf32>
    %cst_14 = arith.constant 1.000000e+00 : f32
    %60 = vector.broadcast %cst_14 : f32 to vector<2x64xf32>
    %61 = arith.addf %60, %59 : vector<2x64xf32>
    %62 = arith.divf %60, %61 : vector<2x64xf32>
    %63 = vector.extract_strided_slice %62 {offsets = [0, 0], sizes = [2, 32], strides = [1, 1]} : vector<2x64xf32> to vector<2x32xf32>
    %64 = vector.extract_strided_slice %62 {offsets = [0, 32], sizes = [2, 32], strides = [1, 1]} : vector<2x64xf32> to vector<2x32xf32>
    %65 = vector.extract_strided_slice %53 {offsets = [0, 64], sizes = [2, 32], strides = [1, 1]} : vector<2x96xf32> to vector<2x32xf32>
    %66 = vector.extract_strided_slice %54 {offsets = [0, 64], sizes = [2, 32], strides = [1, 1]} : vector<2x96xf32> to vector<2x32xf32>
    %67 = arith.addf %66, %3 : vector<2x32xf32>
    %68 = arith.mulf %63, %67 : vector<2x32xf32>
    %69 = arith.addf %65, %68 : vector<2x32xf32>
    %70 = math.tanh %69 : vector<2x32xf32>
    %71 = arith.subf %50, %70 : vector<2x32xf32>
    %72 = arith.mulf %64, %71 : vector<2x32xf32>
    %73 = arith.addf %70, %72 : vector<2x32xf32>
    %c3_i32 = arith.constant 3 : i32
    %74 = arith.index_cast %c3_i32 : i32 to index
    %c0_15 = arith.constant 0 : index
    %c0_16 = arith.constant 0 : index
    %75 = vector.load %arg0[%74, %c0_15, %c0_16] : memref<8x2x96xf32, #tpu.memory_space<vmem>>, vector<1x2x96xf32>
    %76 = vector.shape_cast %75 : vector<1x2x96xf32> to vector<2x96xf32>
    %cst_17 = arith.constant dense<0.000000e+00> : vector<2x96xf32>
    %77 = tpu.matmul %73, %0, %cst_17 {dimension_numbers = #tpu.dot_dimension_numbers<[1], [0], [0], [1], [0, 0, 1, 1], [], []>} : vector<2x32xf32>, vector<32x96xf32>, vector<2x96xf32> -> vector<2x96xf32>
    %78 = vector.extract_strided_slice %76 {offsets = [0, 0], sizes = [2, 64], strides = [1, 1]} : vector<2x96xf32> to vector<2x64xf32>
    %79 = vector.extract_strided_slice %77 {offsets = [0, 0], sizes = [2, 64], strides = [1, 1]} : vector<2x96xf32> to vector<2x64xf32>
    %80 = arith.addf %78, %79 : vector<2x64xf32>
    %81 = arith.negf %80 : vector<2x64xf32>
    %82 = math.exp %81 : vector<2x64xf32>
    %cst_18 = arith.constant 1.000000e+00 : f32
    %83 = vector.broadcast %cst_18 : f32 to vector<2x64xf32>
    %84 = arith.addf %83, %82 : vector<2x64xf32>
    %85 = arith.divf %83, %84 : vector<2x64xf32>
    %86 = vector.extract_strided_slice %85 {offsets = [0, 0], sizes = [2, 32], strides = [1, 1]} : vector<2x64xf32> to vector<2x32xf32>
    %87 = vector.extract_strided_slice %85 {offsets = [0, 32], sizes = [2, 32], strides = [1, 1]} : vector<2x64xf32> to vector<2x32xf32>
    %88 = vector.extract_strided_slice %76 {offsets = [0, 64], sizes = [2, 32], strides = [1, 1]} : vector<2x96xf32> to vector<2x32xf32>
    %89 = vector.extract_strided_slice %77 {offsets = [0, 64], sizes = [2, 32], strides = [1, 1]} : vector<2x96xf32> to vector<2x32xf32>
    %90 = arith.addf %89, %3 : vector<2x32xf32>
    %91 = arith.mulf %86, %90 : vector<2x32xf32>
    %92 = arith.addf %88, %91 : vector<2x32xf32>
    %93 = math.tanh %92 : vector<2x32xf32>
    %94 = arith.subf %73, %93 : vector<2x32xf32>
    %95 = arith.mulf %87, %94 : vector<2x32xf32>
    %96 = arith.addf %93, %95 : vector<2x32xf32>
    %c4_i32 = arith.constant 4 : i32
    %97 = arith.index_cast %c4_i32 : i32 to index
    %c0_19 = arith.constant 0 : index
    %c0_20 = arith.constant 0 : index
    %98 = vector.load %arg0[%97, %c0_19, %c0_20] : memref<8x2x96xf32, #tpu.memory_space<vmem>>, vector<1x2x96xf32>
    %99 = vector.shape_cast %98 : vector<1x2x96xf32> to vector<2x96xf32>
    %cst_21 = arith.constant dense<0.000000e+00> : vector<2x96xf32>
    %100 = tpu.matmul %96, %0, %cst_21 {dimension_numbers = #tpu.dot_dimension_numbers<[1], [0], [0], [1], [0, 0, 1, 1], [], []>} : vector<2x32xf32>, vector<32x96xf32>, vector<2x96xf32> -> vector<2x96xf32>
    %101 = vector.extract_strided_slice %99 {offsets = [0, 0], sizes = [2, 64], strides = [1, 1]} : vector<2x96xf32> to vector<2x64xf32>
    %102 = vector.extract_strided_slice %100 {offsets = [0, 0], sizes = [2, 64], strides = [1, 1]} : vector<2x96xf32> to vector<2x64xf32>
    %103 = arith.addf %101, %102 : vector<2x64xf32>
    %104 = arith.negf %103 : vector<2x64xf32>
    %105 = math.exp %104 : vector<2x64xf32>
    %cst_22 = arith.constant 1.000000e+00 : f32
    %106 = vector.broadcast %cst_22 : f32 to vector<2x64xf32>
    %107 = arith.addf %106, %105 : vector<2x64xf32>
    %108 = arith.divf %106, %107 : vector<2x64xf32>
    %109 = vector.extract_strided_slice %108 {offsets = [0, 0], sizes = [2, 32], strides = [1, 1]} : vector<2x64xf32> to vector<2x32xf32>
    %110 = vector.extract_strided_slice %108 {offsets = [0, 32], sizes = [2, 32], strides = [1, 1]} : vector<2x64xf32> to vector<2x32xf32>
    %111 = vector.extract_strided_slice %99 {offsets = [0, 64], sizes = [2, 32], strides = [1, 1]} : vector<2x96xf32> to vector<2x32xf32>
    %112 = vector.extract_strided_slice %100 {offsets = [0, 64], sizes = [2, 32], strides = [1, 1]} : vector<2x96xf32> to vector<2x32xf32>
    %113 = arith.addf %112, %3 : vector<2x32xf32>
    %114 = arith.mulf %109, %113 : vector<2x32xf32>
    %115 = arith.addf %111, %114 : vector<2x32xf32>
    %116 = math.tanh %115 : vector<2x32xf32>
    %117 = arith.subf %96, %116 : vector<2x32xf32>
    %118 = arith.mulf %110, %117 : vector<2x32xf32>
    %119 = arith.addf %116, %118 : vector<2x32xf32>
    %c5_i32 = arith.constant 5 : i32
    %120 = arith.index_cast %c5_i32 : i32 to index
    %c0_23 = arith.constant 0 : index
    %c0_24 = arith.constant 0 : index
    %121 = vector.load %arg0[%120, %c0_23, %c0_24] : memref<8x2x96xf32, #tpu.memory_space<vmem>>, vector<1x2x96xf32>
    %122 = vector.shape_cast %121 : vector<1x2x96xf32> to vector<2x96xf32>
    %cst_25 = arith.constant dense<0.000000e+00> : vector<2x96xf32>
    %123 = tpu.matmul %119, %0, %cst_25 {dimension_numbers = #tpu.dot_dimension_numbers<[1], [0], [0], [1], [0, 0, 1, 1], [], []>} : vector<2x32xf32>, vector<32x96xf32>, vector<2x96xf32> -> vector<2x96xf32>
    %124 = vector.extract_strided_slice %122 {offsets = [0, 0], sizes = [2, 64], strides = [1, 1]} : vector<2x96xf32> to vector<2x64xf32>
    %125 = vector.extract_strided_slice %123 {offsets = [0, 0], sizes = [2, 64], strides = [1, 1]} : vector<2x96xf32> to vector<2x64xf32>
    %126 = arith.addf %124, %125 : vector<2x64xf32>
    %127 = arith.negf %126 : vector<2x64xf32>
    %128 = math.exp %127 : vector<2x64xf32>
    %cst_26 = arith.constant 1.000000e+00 : f32
    %129 = vector.broadcast %cst_26 : f32 to vector<2x64xf32>
    %130 = arith.addf %129, %128 : vector<2x64xf32>
    %131 = arith.divf %129, %130 : vector<2x64xf32>
    %132 = vector.extract_strided_slice %131 {offsets = [0, 0], sizes = [2, 32], strides = [1, 1]} : vector<2x64xf32> to vector<2x32xf32>
    %133 = vector.extract_strided_slice %131 {offsets = [0, 32], sizes = [2, 32], strides = [1, 1]} : vector<2x64xf32> to vector<2x32xf32>
    %134 = vector.extract_strided_slice %122 {offsets = [0, 64], sizes = [2, 32], strides = [1, 1]} : vector<2x96xf32> to vector<2x32xf32>
    %135 = vector.extract_strided_slice %123 {offsets = [0, 64], sizes = [2, 32], strides = [1, 1]} : vector<2x96xf32> to vector<2x32xf32>
    %136 = arith.addf %135, %3 : vector<2x32xf32>
    %137 = arith.mulf %132, %136 : vector<2x32xf32>
    %138 = arith.addf %134, %137 : vector<2x32xf32>
    %139 = math.tanh %138 : vector<2x32xf32>
    %140 = arith.subf %119, %139 : vector<2x32xf32>
    %141 = arith.mulf %133, %140 : vector<2x32xf32>
    %142 = arith.addf %139, %141 : vector<2x32xf32>
    %c6_i32 = arith.constant 6 : i32
    %143 = arith.index_cast %c6_i32 : i32 to index
    %c0_27 = arith.constant 0 : index
    %c0_28 = arith.constant 0 : index
    %144 = vector.load %arg0[%143, %c0_27, %c0_28] : memref<8x2x96xf32, #tpu.memory_space<vmem>>, vector<1x2x96xf32>
    %145 = vector.shape_cast %144 : vector<1x2x96xf32> to vector<2x96xf32>
    %cst_29 = arith.constant dense<0.000000e+00> : vector<2x96xf32>
    %146 = tpu.matmul %142, %0, %cst_29 {dimension_numbers = #tpu.dot_dimension_numbers<[1], [0], [0], [1], [0, 0, 1, 1], [], []>} : vector<2x32xf32>, vector<32x96xf32>, vector<2x96xf32> -> vector<2x96xf32>
    %147 = vector.extract_strided_slice %145 {offsets = [0, 0], sizes = [2, 64], strides = [1, 1]} : vector<2x96xf32> to vector<2x64xf32>
    %148 = vector.extract_strided_slice %146 {offsets = [0, 0], sizes = [2, 64], strides = [1, 1]} : vector<2x96xf32> to vector<2x64xf32>
    %149 = arith.addf %147, %148 : vector<2x64xf32>
    %150 = arith.negf %149 : vector<2x64xf32>
    %151 = math.exp %150 : vector<2x64xf32>
    %cst_30 = arith.constant 1.000000e+00 : f32
    %152 = vector.broadcast %cst_30 : f32 to vector<2x64xf32>
    %153 = arith.addf %152, %151 : vector<2x64xf32>
    %154 = arith.divf %152, %153 : vector<2x64xf32>
    %155 = vector.extract_strided_slice %154 {offsets = [0, 0], sizes = [2, 32], strides = [1, 1]} : vector<2x64xf32> to vector<2x32xf32>
    %156 = vector.extract_strided_slice %154 {offsets = [0, 32], sizes = [2, 32], strides = [1, 1]} : vector<2x64xf32> to vector<2x32xf32>
    %157 = vector.extract_strided_slice %145 {offsets = [0, 64], sizes = [2, 32], strides = [1, 1]} : vector<2x96xf32> to vector<2x32xf32>
    %158 = vector.extract_strided_slice %146 {offsets = [0, 64], sizes = [2, 32], strides = [1, 1]} : vector<2x96xf32> to vector<2x32xf32>
    %159 = arith.addf %158, %3 : vector<2x32xf32>
    %160 = arith.mulf %155, %159 : vector<2x32xf32>
    %161 = arith.addf %157, %160 : vector<2x32xf32>
    %162 = math.tanh %161 : vector<2x32xf32>
    %163 = arith.subf %142, %162 : vector<2x32xf32>
    %164 = arith.mulf %156, %163 : vector<2x32xf32>
    %165 = arith.addf %162, %164 : vector<2x32xf32>
    %c7_i32 = arith.constant 7 : i32
    %166 = arith.index_cast %c7_i32 : i32 to index
    %c0_31 = arith.constant 0 : index
    %c0_32 = arith.constant 0 : index
    %167 = vector.load %arg0[%166, %c0_31, %c0_32] : memref<8x2x96xf32, #tpu.memory_space<vmem>>, vector<1x2x96xf32>
    %168 = vector.shape_cast %167 : vector<1x2x96xf32> to vector<2x96xf32>
    %cst_33 = arith.constant dense<0.000000e+00> : vector<2x96xf32>
    %169 = tpu.matmul %165, %0, %cst_33 {dimension_numbers = #tpu.dot_dimension_numbers<[1], [0], [0], [1], [0, 0, 1, 1], [], []>} : vector<2x32xf32>, vector<32x96xf32>, vector<2x96xf32> -> vector<2x96xf32>
    %170 = vector.extract_strided_slice %168 {offsets = [0, 0], sizes = [2, 64], strides = [1, 1]} : vector<2x96xf32> to vector<2x64xf32>
    %171 = vector.extract_strided_slice %169 {offsets = [0, 0], sizes = [2, 64], strides = [1, 1]} : vector<2x96xf32> to vector<2x64xf32>
    %172 = arith.addf %170, %171 : vector<2x64xf32>
    %173 = arith.negf %172 : vector<2x64xf32>
    %174 = math.exp %173 : vector<2x64xf32>
    %cst_34 = arith.constant 1.000000e+00 : f32
    %175 = vector.broadcast %cst_34 : f32 to vector<2x64xf32>
    %176 = arith.addf %175, %174 : vector<2x64xf32>
    %177 = arith.divf %175, %176 : vector<2x64xf32>
    %178 = vector.extract_strided_slice %177 {offsets = [0, 0], sizes = [2, 32], strides = [1, 1]} : vector<2x64xf32> to vector<2x32xf32>
    %179 = vector.extract_strided_slice %177 {offsets = [0, 32], sizes = [2, 32], strides = [1, 1]} : vector<2x64xf32> to vector<2x32xf32>
    %180 = vector.extract_strided_slice %168 {offsets = [0, 64], sizes = [2, 32], strides = [1, 1]} : vector<2x96xf32> to vector<2x32xf32>
    %181 = vector.extract_strided_slice %169 {offsets = [0, 64], sizes = [2, 32], strides = [1, 1]} : vector<2x96xf32> to vector<2x32xf32>
    %182 = arith.addf %181, %3 : vector<2x32xf32>
    %183 = arith.mulf %178, %182 : vector<2x32xf32>
    %184 = arith.addf %180, %183 : vector<2x32xf32>
    %185 = math.tanh %184 : vector<2x32xf32>
    %186 = arith.subf %165, %185 : vector<2x32xf32>
    %187 = arith.mulf %179, %186 : vector<2x32xf32>
    %188 = arith.addf %185, %187 : vector<2x32xf32>
    %c8_i32 = arith.constant 8 : i32
    %c0_35 = arith.constant 0 : index
    %c0_36 = arith.constant 0 : index
    %189 = vector.load %arg3[%c0_35, %c0_36] : memref<32x4xf32, #tpu.memory_space<vmem>>, vector<32x4xf32>
    %cst_37 = arith.constant dense<0.000000e+00> : vector<2x4xf32>
    %190 = tpu.matmul %188, %189, %cst_37 {dimension_numbers = #tpu.dot_dimension_numbers<[1], [0], [0], [1], [0, 0, 1, 1], [], []>} : vector<2x32xf32>, vector<32x4xf32>, vector<2x4xf32> -> vector<2x4xf32>
    %c0_38 = arith.constant 0 : index
    %c0_39 = arith.constant 0 : index
    %191 = vector.load %arg4[%c0_38, %c0_39] : memref<1x4xf32, #tpu.memory_space<vmem>>, vector<1x4xf32>
    %192 = vector.broadcast %191 : vector<1x4xf32> to vector<2x4xf32>
    %193 = arith.addf %190, %192 : vector<2x4xf32>
    %c0_40 = arith.constant 0 : index
    %c0_41 = arith.constant 0 : index
    %194 = vector.load %arg5[%c0_40, %c0_41] : memref<2x4xf32, #tpu.memory_space<vmem>>, vector<2x4xf32>
    tpu.vector_store %arg5[%c0_40, %c0_41], %193 {strides = array<i32>} : memref<2x4xf32, #tpu.memory_space<vmem>>, vector<2x4xf32>,
    return
  }
}

</mosaic_0001>

<bundles_post_ra>
// kernel: gru_forward.1
= control target key start
LH: loop header
LB: loop body
LE: loop exit
PB: predicated region body
PF: predicated region fallthrough
CT: control target
= control target key end

     0   :  { %s895_s0 = inlined_call_operand.vmem [shape: f32[8,2,96], index: 0, kind: input, shape index: {}]   ;;  %s896_s1 = inlined_call_operand.vmem [shape: f32[32,96], index: 1, kind: input, shape index: {}]   ;;  %s897_s2 = inlined_call_operand.vmem [shape: f32[1,32], index: 2, kind: input, shape index: {}]   ;;  %s898_s3 = inlined_call_operand.vmem [shape: f32[32,4], index: 3, kind: input, shape index: {}]   ;;  %s899_s4 = inlined_call_operand.vmem [shape: f32[1,4], index: 4, kind: input, shape index: {}]   ;;  %s900_s5 = inlined_call_operand.hbm [shape: f32[2,4], index: 5, kind: output, shape index: {}]  }
   0x1   :  { %v24_v0 = vld [vmem:[%s896_s1 + $0x18] sm:$0xff]  ;;  %v23_v1 = vld [vmem:[%s896_s1 + $0x10] sm:$0xff]  ;;  %v668_v2 = vld [vmem:[%s897_s2] ss:$0 sm:$0xff] }
   0x2   :  { %45 = vmatpush.msra.mxu0 %v24_v0  ;;  %118 = vmatpush.msra.mxu1 %v24_v0  ;;  %v22_v3 = vld [vmem:[%s896_s1 + $0x8] sm:$0xff] }
   0x3   :  { %188 = vmatpush.msra.mxu2 %v24_v0  ;;  %258 = vmatpush.msra.mxu3 %v24_v0 }
   0x4   :  { %10 = vsyncpa [#allocation3], 0  ;;  %46 = vmatpush.msra.mxu0 %v23_v1  ;;  %s744_s26 = smov 64   ;;  %v21_v4 = vld [vmem:[%s896_s1] sm:$0xff]  ;;  %119 = vmatpush.msra.mxu1 %v23_v1  ;;  %v745_v5 = vmov 0.0   ;;  %s746_s29 = smov 96  }
   0x5   :  { %73 = vrot.lane.b32.xlu0 %v668_v2, %s744_s26  ;;  %189 = vmatpush.msra.mxu2 %v23_v1  ;;  %v28_v9 = vld [vmem:[%s895_s0] sm:$0x3]  ;;  %s747_s30 = smov 32   ;;  %vm29_vm4 = vcmask 261120   ;;  %v641_v37 = vld [vmem:[%s895_s0 + $0x2] sm:$0x3] }
   0x6   :  { %47 = vmatpush.msra.mxu0 %v22_v3  ;;  %259 = vmatpush.msra.mxu3 %v23_v1  ;;  %s748_s2 = smov [#allocation2]   ;;  %s631_s7 = sshll.u32 %s900_s5, 4  ;;  %s632_s7 = int_to_ptr.hbm [resolvable:$true] %s631_s7 }
   0x7   :  { %120 = vmatpush.msra.mxu1 %v22_v3  ;;  %190 = vmatpush.msra.mxu2 %v22_v3 }
   0x8   :  { %48 = vmatpush.msra.mxu0 %v21_v4  ;;  %260 = vmatpush.msra.mxu3 %v22_v3 }
   0x9   :  { %49 = vmatmul.f32.vlgmr.msra.gmra.mxu0 %v745_v5  ;;  %121 = vmatpush.msra.mxu1 %v21_v4 }
   0xa   :  { %191 = vmatpush.msra.mxu2 %v21_v4  ;;  %261 = vmatpush.msra.mxu3 %v21_v4 }
   0xb   :  { %328 = vmatpush.msrb.mxu0 %v24_v0  ;;  %398 = vmatpush.msrb.mxu1 %v24_v0 }
   0xc   :  { %468 = vmatpush.msrb.mxu2 %v24_v0  ;;  %538 = vmatpush.msrb.mxu3 %v24_v0 }
   0xd   :  { %329 = vmatpush.msrb.mxu0 %v23_v1  ;;  %399 = vmatpush.msrb.mxu1 %v23_v1 }
   0xe   :  { %469 = vmatpush.msrb.mxu2 %v23_v1  ;;  %539 = vmatpush.msrb.mxu3 %v23_v1  ;;  %v644_v1 = vld [vmem:[%s895_s0 + $0x4] sm:$0x3] }
   0xf   :  { %330 = vmatpush.msrb.mxu0 %v22_v3  ;;  %400 = vmatpush.msrb.mxu1 %v22_v3 }
  0x10   :  { %470 = vmatpush.msrb.mxu2 %v22_v3  ;;  %540 = vmatpush.msrb.mxu3 %v22_v3 }
  0x11   :  { %331 = vmatpush.msrb.mxu0 %v21_v4  ;;  %401 = vmatpush.msrb.mxu1 %v21_v4 }
  0x12   :  { %471 = vmatpush.msrb.mxu2 %v21_v4  ;;  %541 = vmatpush.msrb.mxu3 %v21_v4 }
  0x77   :  { %v795_v6 = vpop.permute.xlu0 %73 }
  0x86   :  { %v50_v7 = vpop.f32.mrf.mxu0 }
  0x87   :  { %v76_v8 = vadd.f32 %v795_v6, %v50_v7  ;;  %v53_v10 = vadd.f32 %v50_v7, %v28_v9 }
  0x89   :  { %78 = vrot.lane.b32.xlu0 %v76_v8, %s744_s26  ;;  %v640_v11 = vmul.f32 -1.442695, %v53_v10 }
  0x8b   :  { %670 = vpow2.f32 %v640_v11 }
  0x91   :  { %v671_v12 = vpop.eup %670 }
  0x92   :  { %v57_v13 = vadd.f32 1.0, %v671_v12 }
  0x94   :  { %672 = vrcp.f32 %v57_v13  ;;  %v69_v19 = vand.u32 2147483648, %v57_v13  ;;  %vm63_vm1 = vweird.f32 %v57_v13  ;;  %v67_v20 = vand.u32 2147483647, %v57_v13 }
  0x96   :  { %v70_v22 = vor.u32 1.1754944e-38, %v69_v19  ;;  %vm68_vm3 = vcmp.eq.f32.partialorder %v67_v20, 8.507059e+37 }
  0x9a   :  { %v673_v14 = vpop.eup %672 }
  0x9b   :  { %v59_v15 = vmul.f32 %v673_v14, %v57_v13  ;;  %vm64_vm0 = vweird.f32 %v673_v14 }
  0x9c   :  { %vm65_vm2 = vmor %vm63_vm1, %vm64_vm0 }
  0x9d   :  { %v60_v16 = vsub.f32 1.0, %v59_v15 }
  0x9f   :  { %v61_v17 = vmul.f32 %v673_v14, %v60_v16 }
  0xa1   :  { %v62_v18 = vadd.f32 %v673_v14, %v61_v17 }
  0xa3   :  { %v66_v21 = vsel %vm65_vm2, %v673_v14, %v62_v18 }
  0xa4   :  { %v71_v24 = vsel %vm68_vm3, %v70_v22, %v66_v21 }
  0xfb   :  { %v79_v23 = vpop.permute.xlu0 %78 }
  0xfc   :  { %v81_v25 = vmul.f32 %v79_v23, %v71_v24 }
  0xfe   :  { %83 = vrot.lane.b32.xlu1 %v81_v25, %s744_s26 }
 0x170   :  { %v84_v26 = vpop.permute.xlu1 %83 }
 0x171   :  { %v86_v27 = vadd.f32 %v84_v26, %v28_v9 }
 0x173   :  { %674 = vtanh.f32 %v86_v27 }
 0x179   :  { %v675_v28 = vpop.eup %674 }
 0x17a   :  { %v88_v29 = vsub.f32 0.0, %v675_v28 }
 0x17c   :  { %90 = vrot.lane.b32.xlu1 %v88_v29, %s746_s29 }
 0x1ee   :  { %v91_v30 = vpop.permute.xlu1 %90 }
 0x1ef   :  { %v93_v31 = vmul.f32 %v91_v30, %v71_v24  ;;  %v647_v30 = vld [vmem:[%s895_s0 + $0x6] sm:$0x3] }
 0x1f1   :  { %95 = vrot.lane.b32.xlu2 %v93_v31, %s747_s30 }
 0x24b   :  { %v96_v32 = vpop.permute.xlu2 %95 }
 0x24c   :  { %v98_v33 = vadd.f32 %v675_v28, %v96_v32 }
 0x24e   :  { %102 = vrot.lane.b32.xlu2 %v98_v33, %s744_s26 }
 0x2a8   :  { %v103_v34 = vpop.permute.xlu2 %102 }
 0x2a9   :  { %642 = vmatmul.msk.f32.vlgmr.msra.gmra.mxu1 %vm29_vm4, %v103_v34 }
 0x326   :  { %v123_v35 = vpop.f32.mrf.mxu1 }
 0x327   :  { %v146_v36 = vadd.f32 %v123_v35, %v795_v6  ;;  %v126_v38 = vadd.f32 %v641_v37, %v123_v35 }
 0x329   :  { %148 = vrot.lane.b32.xlu0 %v146_v36, %s744_s26  ;;  %v643_v39 = vmul.f32 -1.442695, %v126_v38 }
 0x32b   :  { %676 = vpow2.f32 %v643_v39 }
 0x331   :  { %v677_v40 = vpop.eup %676 }
 0x332   :  { %v130_v41 = vadd.f32 1.0, %v677_v40 }
 0x334   :  { %678 = vrcp.f32 %v130_v41  ;;  %v142_v47 = vand.u32 2147483648, %v130_v41  ;;  %vm136_vm6 = vweird.f32 %v130_v41  ;;  %v140_v48 = vand.u32 2147483647, %v130_v41 }
 0x336   :  { %v143_v50 = vor.u32 1.1754944e-38, %v142_v47  ;;  %vm141_vm8 = vcmp.eq.f32.partialorder %v140_v48, 8.507059e+37 }
 0x33a   :  { %v679_v42 = vpop.eup %678 }
 0x33b   :  { %v132_v43 = vmul.f32 %v679_v42, %v130_v41  ;;  %vm137_vm5 = vweird.f32 %v679_v42 }
 0x33c   :  { %vm138_vm7 = vmor %vm136_vm6, %vm137_vm5 }
 0x33d   :  { %v133_v44 = vsub.f32 1.0, %v132_v43 }
 0x33f   :  { %v134_v45 = vmul.f32 %v679_v42, %v133_v44 }
 0x341   :  { %v135_v46 = vadd.f32 %v679_v42, %v134_v45 }
 0x343   :  { %v139_v49 = vsel %vm138_vm7, %v679_v42, %v135_v46 }
 0x344   :  { %v144_v52 = vsel %vm141_vm8, %v143_v50, %v139_v49 }
 0x39b   :  { %v149_v51 = vpop.permute.xlu0 %148 }
 0x39c   :  { %v151_v53 = vmul.f32 %v149_v51, %v144_v52 }
 0x39e   :  { %153 = vrot.lane.b32.xlu1 %v151_v53, %s744_s26 }
 0x410   :  { %v154_v54 = vpop.permute.xlu1 %153 }
 0x411   :  { %v156_v55 = vadd.f32 %v641_v37, %v154_v54 }
 0x413   :  { %680 = vtanh.f32 %v156_v55 }
 0x419   :  { %v681_v56 = vpop.eup %680 }
 0x41a   :  { %v158_v57 = vsub.f32 %v98_v33, %v681_v56 }
 0x41c   :  { %160 = vrot.lane.b32.xlu2 %v158_v57, %s746_s29 }
 0x476   :  { %v161_v58 = vpop.permute.xlu2 %160 }
 0x477   :  { %v163_v59 = vmul.f32 %v161_v58, %v144_v52  ;;  %v650_v58 = vld [vmem:[%s895_s0 + $0x8] sm:$0x3] }
 0x479   :  { %165 = vrot.lane.b32.xlu0 %v163_v59, %s747_s30 }
 0x4eb   :  { %v166_v60 = vpop.permute.xlu0 %165 }
 0x4ec   :  { %v168_v61 = vadd.f32 %v681_v56, %v166_v60 }
 0x4ee   :  { %172 = vrot.lane.b32.xlu1 %v168_v61, %s744_s26 }
 0x560   :  { %v173_v62 = vpop.permute.xlu1 %172 }
 0x561   :  { %645 = vmatmul.msk.f32.vlgmr.msra.gmra.mxu2 %vm29_vm4, %v173_v62 }
 0x5e4   :  { %v193_v63 = vpop.f32.mrf.mxu2 }
 0x5e5   :  { %v216_v0 = vadd.f32 %v193_v63, %v795_v6  ;;  %v196_v2 = vadd.f32 %v644_v1, %v193_v63 }
 0x5e7   :  { %218 = vrot.lane.b32.xlu2 %v216_v0, %s744_s26  ;;  %v646_v3 = vmul.f32 -1.442695, %v196_v2 }
 0x5e9   :  { %682 = vpow2.f32 %v646_v3 }
 0x5ef   :  { %v683_v4 = vpop.eup %682 }
 0x5f0   :  { %v200_v5 = vadd.f32 1.0, %v683_v4 }
 0x5f2   :  { %684 = vrcp.f32 %v200_v5  ;;  %v212_v12 = vand.u32 2147483648, %v200_v5  ;;  %vm206_vm10 = vweird.f32 %v200_v5  ;;  %v210_v13 = vand.u32 2147483647, %v200_v5 }
 0x5f4   :  { %v213_v15 = vor.u32 1.1754944e-38, %v212_v12  ;;  %vm211_vm12 = vcmp.eq.f32.partialorder %v210_v13, 8.507059e+37 }
 0x5f8   :  { %v685_v7 = vpop.eup %684 }
 0x5f9   :  { %v202_v8 = vmul.f32 %v685_v7, %v200_v5  ;;  %vm207_vm9 = vweird.f32 %v685_v7 }
 0x5fa   :  { %vm208_vm11 = vmor %vm206_vm10, %vm207_vm9 }
 0x5fb   :  { %v203_v9 = vsub.f32 1.0, %v202_v8 }
 0x5fd   :  { %v204_v10 = vmul.f32 %v685_v7, %v203_v9 }
 0x5ff   :  { %v205_v11 = vadd.f32 %v685_v7, %v204_v10 }
 0x601   :  { %v209_v14 = vsel %vm208_vm11, %v685_v7, %v205_v11 }
 0x602   :  { %v214_v17 = vsel %vm211_vm12, %v213_v15, %v209_v14 }
 0x641   :  { %v219_v16 = vpop.permute.xlu2 %218 }
 0x642   :  { %v221_v18 = vmul.f32 %v219_v16, %v214_v17 }
 0x644   :  { %223 = vrot.lane.b32.xlu0 %v221_v18, %s744_s26 }
 0x6b6   :  { %v224_v19 = vpop.permute.xlu0 %223 }
 0x6b7   :  { %v226_v20 = vadd.f32 %v644_v1, %v224_v19 }
 0x6b9   :  { %686 = vtanh.f32 %v226_v20 }
 0x6bf   :  { %v687_v21 = vpop.eup %686 }
 0x6c0   :  { %v228_v22 = vsub.f32 %v168_v61, %v687_v21 }
 0x6c2   :  { %230 = vrot.lane.b32.xlu1 %v228_v22, %s746_s29 }
 0x734   :  { %v231_v23 = vpop.permute.xlu1 %230 }
 0x735   :  { %v233_v24 = vmul.f32 %v231_v23, %v214_v17  ;;  %v653_v23 = vld [vmem:[%s895_s0 + $0xa] sm:$0x3] }
 0x737   :  { %235 = vrot.lane.b32.xlu2 %v233_v24, %s747_s30 }
 0x791   :  { %v236_v25 = vpop.permute.xlu2 %235 }
 0x792   :  { %v238_v26 = vadd.f32 %v687_v21, %v236_v25 }
 0x794   :  { %242 = vrot.lane.b32.xlu0 %v238_v26, %s744_s26 }
 0x806   :  { %v243_v27 = vpop.permute.xlu0 %242 }
 0x807   :  { %648 = vmatmul.msk.f32.vlgmr.msra.gmra.mxu3 %vm29_vm4, %v243_v27 }
 0x88a   :  { %v263_v28 = vpop.f32.mrf.mxu3 }
 0x88b   :  { %v286_v29 = vadd.f32 %v263_v28, %v795_v6  ;;  %v266_v31 = vadd.f32 %v647_v30, %v263_v28 }
 0x88d   :  { %288 = vrot.lane.b32.xlu1 %v286_v29, %s744_s26  ;;  %v649_v32 = vmul.f32 -1.442695, %v266_v31 }
 0x88f   :  { %688 = vpow2.f32 %v649_v32 }
 0x895   :  { %v689_v33 = vpop.eup %688 }
 0x896   :  { %v270_v34 = vadd.f32 1.0, %v689_v33 }
 0x898   :  { %690 = vrcp.f32 %v270_v34  ;;  %v282_v40 = vand.u32 2147483648, %v270_v34  ;;  %vm276_vm14 = vweird.f32 %v270_v34  ;;  %v280_v41 = vand.u32 2147483647, %v270_v34 }
 0x89a   :  { %v283_v43 = vor.u32 1.1754944e-38, %v282_v40  ;;  %vm281_vm0 = vcmp.eq.f32.partialorder %v280_v41, 8.507059e+37 }
 0x89e   :  { %v691_v35 = vpop.eup %690 }
 0x89f   :  { %v272_v36 = vmul.f32 %v691_v35, %v270_v34  ;;  %vm277_vm13 = vweird.f32 %v691_v35 }
 0x8a0   :  { %vm278_vm15 = vmor %vm276_vm14, %vm277_vm13 }
 0x8a1   :  { %v273_v37 = vsub.f32 1.0, %v272_v36 }
 0x8a3   :  { %v274_v38 = vmul.f32 %v691_v35, %v273_v37 }
 0x8a5   :  { %v275_v39 = vadd.f32 %v691_v35, %v274_v38 }
 0x8a7   :  { %v279_v42 = vsel %vm278_vm15, %v691_v35, %v275_v39 }
 0x8a8   :  { %v284_v45 = vsel %vm281_vm0, %v283_v43, %v279_v42 }
 0x8ff   :  { %v289_v44 = vpop.permute.xlu1 %288 }
 0x900   :  { %v291_v46 = vmul.f32 %v289_v44, %v284_v45 }
 0x902   :  { %293 = vrot.lane.b32.xlu2 %v291_v46, %s744_s26 }
 0x95c   :  { %v294_v47 = vpop.permute.xlu2 %293 }
 0x95d   :  { %v296_v48 = vadd.f32 %v647_v30, %v294_v47 }
 0x95f   :  { %692 = vtanh.f32 %v296_v48 }
 0x965   :  { %v693_v49 = vpop.eup %692 }
 0x966   :  { %v298_v50 = vsub.f32 %v238_v26, %v693_v49 }
 0x968   :  { %300 = vrot.lane.b32.xlu0 %v298_v50, %s746_s29 }
 0x9da   :  { %v301_v51 = vpop.permute.xlu0 %300 }
 0x9db   :  { %v303_v52 = vmul.f32 %v301_v51, %v284_v45  ;;  %v656_v51 = vld [vmem:[%s895_s0 + $0xc] sm:$0x3] }
 0x9dd   :  { %305 = vrot.lane.b32.xlu1 %v303_v52, %s747_s30 }
 0xa4f   :  { %v306_v53 = vpop.permute.xlu1 %305 }
 0xa50   :  { %v308_v54 = vadd.f32 %v693_v49, %v306_v53 }
 0xa52   :  { %312 = vrot.lane.b32.xlu2 %v308_v54, %s744_s26 }
 0xaac   :  { %v313_v55 = vpop.permute.xlu2 %312 }
 0xaad   :  { %651 = vmatmul.msk.f32.vlgmr.msrb.gmra.mxu0 %vm29_vm4, %v313_v55 }
 0xb2a   :  { %v333_v56 = vpop.f32.mrf.mxu0 }
 0xb2b   :  { %v356_v57 = vadd.f32 %v333_v56, %v795_v6  ;;  %v336_v59 = vadd.f32 %v650_v58, %v333_v56 }
 0xb2d   :  { %358 = vrot.lane.b32.xlu0 %v356_v57, %s744_s26  ;;  %v652_v60 = vmul.f32 -1.442695, %v336_v59 }
 0xb2f   :  { %694 = vpow2.f32 %v652_v60 }
 0xb35   :  { %v695_v61 = vpop.eup %694 }
 0xb36   :  { %v340_v62 = vadd.f32 1.0, %v695_v61 }
 0xb38   :  { %696 = vrcp.f32 %v340_v62  ;;  %v352_v4 = vand.u32 2147483648, %v340_v62  ;;  %vm346_vm2 = vweird.f32 %v340_v62  ;;  %v350_v5 = vand.u32 2147483647, %v340_v62 }
 0xb3a   :  { %v353_v8 = vor.u32 1.1754944e-38, %v352_v4  ;;  %vm351_vm5 = vcmp.eq.f32.partialorder %v350_v5, 8.507059e+37 }
 0xb3e   :  { %v697_v63 = vpop.eup %696 }
 0xb3f   :  { %v342_v0 = vmul.f32 %v697_v63, %v340_v62  ;;  %vm347_vm1 = vweird.f32 %v697_v63 }
 0xb40   :  { %vm348_vm3 = vmor %vm346_vm2, %vm347_vm1  ;;  %vm622_vm2 = vcmask 25600  }
 0xb41   :  { %v343_v1 = vsub.f32 1.0, %v342_v0 }
 0xb43   :  { %v344_v2 = vmul.f32 %v697_v63, %v343_v1 }
 0xb45   :  { %v345_v3 = vadd.f32 %v697_v63, %v344_v2 }
 0xb47   :  { %v349_v7 = vsel %vm348_vm3, %v697_v63, %v345_v3 }
 0xb48   :  { %v354_v10 = vsel %vm351_vm5, %v353_v8, %v349_v7 }
 0xb9f   :  { %v359_v9 = vpop.permute.xlu0 %358 }
 0xba0   :  { %v361_v11 = vmul.f32 %v359_v9, %v354_v10 }
 0xba2   :  { %363 = vrot.lane.b32.xlu1 %v361_v11, %s744_s26 }
 0xc14   :  { %v364_v12 = vpop.permute.xlu1 %363 }
 0xc15   :  { %v366_v13 = vadd.f32 %v650_v58, %v364_v12 }
 0xc17   :  { %698 = vtanh.f32 %v366_v13 }
 0xc1d   :  { %v699_v14 = vpop.eup %698 }
 0xc1e   :  { %v368_v15 = vsub.f32 %v308_v54, %v699_v14 }
 0xc20   :  { %370 = vrot.lane.b32.xlu2 %v368_v15, %s746_s29 }
 0xc7a   :  { %v371_v16 = vpop.permute.xlu2 %370 }
 0xc7b   :  { %v373_v17 = vmul.f32 %v371_v16, %v354_v10  ;;  %v659_v16 = vld [vmem:[%s895_s0 + $0xe] sm:$0x3] }
 0xc7d   :  { %375 = vrot.lane.b32.xlu0 %v373_v17, %s747_s30 }
 0xcef   :  { %v376_v18 = vpop.permute.xlu0 %375 }
 0xcf0   :  { %v378_v19 = vadd.f32 %v699_v14, %v376_v18 }
 0xcf2   :  { %382 = vrot.lane.b32.xlu1 %v378_v19, %s744_s26 }
 0xd64   :  { %v383_v20 = vpop.permute.xlu1 %382 }
 0xd65   :  { %654 = vmatmul.msk.f32.vlgmr.msrb.gmra.mxu1 %vm29_vm4, %v383_v20 }
 0xde2   :  { %v403_v21 = vpop.f32.mrf.mxu1 }
 0xde3   :  { %v426_v22 = vadd.f32 %v403_v21, %v795_v6  ;;  %v406_v24 = vadd.f32 %v653_v23, %v403_v21 }
 0xde5   :  { %428 = vrot.lane.b32.xlu2 %v426_v22, %s744_s26  ;;  %v655_v25 = vmul.f32 -1.442695, %v406_v24 }
 0xde7   :  { %700 = vpow2.f32 %v655_v25 }
 0xded   :  { %v701_v26 = vpop.eup %700 }
 0xdee   :  { %v410_v27 = vadd.f32 1.0, %v701_v26 }
 0xdf0   :  { %702 = vrcp.f32 %v410_v27  ;;  %v422_v33 = vand.u32 2147483648, %v410_v27  ;;  %vm416_vm7 = vweird.f32 %v410_v27  ;;  %v420_v34 = vand.u32 2147483647, %v410_v27 }
 0xdf2   :  { %v423_v36 = vor.u32 1.1754944e-38, %v422_v33  ;;  %vm421_vm9 = vcmp.eq.f32.partialorder %v420_v34, 8.507059e+37 }
 0xdf6   :  { %v703_v28 = vpop.eup %702 }
 0xdf7   :  { %v412_v29 = vmul.f32 %v703_v28, %v410_v27  ;;  %vm417_vm6 = vweird.f32 %v703_v28 }
 0xdf8   :  { %vm418_vm8 = vmor %vm416_vm7, %vm417_vm6 }
 0xdf9   :  { %v413_v30 = vsub.f32 1.0, %v412_v29 }
 0xdfb   :  { %v414_v31 = vmul.f32 %v703_v28, %v413_v30 }
 0xdfd   :  { %v415_v32 = vadd.f32 %v703_v28, %v414_v31 }
 0xdff   :  { %v419_v35 = vsel %vm418_vm8, %v703_v28, %v415_v32 }
 0xe00   :  { %v424_v38 = vsel %vm421_vm9, %v423_v36, %v419_v35 }
 0xe3f   :  { %v429_v37 = vpop.permute.xlu2 %428 }
 0xe40   :  { %v431_v39 = vmul.f32 %v429_v37, %v424_v38 }
 0xe42   :  { %433 = vrot.lane.b32.xlu0 %v431_v39, %s744_s26  ;;  %v591_v39 = vld [vmem:[%s898_s3 + $0x10] sm:$0xff] }
 0xeb4   :  { %v434_v40 = vpop.permute.xlu0 %433 }
 0xeb5   :  { %v436_v41 = vadd.f32 %v653_v23, %v434_v40  ;;  %v590_v40 = vld [vmem:[%s898_s3 + $0x8] sm:$0xff] }
 0xeb7   :  { %704 = vtanh.f32 %v436_v41  ;;  %v589_v41 = vld [vmem:[%s898_s3] sm:$0xff] }
 0xebd   :  { %v705_v42 = vpop.eup %704 }
 0xebe   :  { %v438_v43 = vsub.f32 %v378_v19, %v705_v42 }
 0xec0   :  { %440 = vrot.lane.b32.xlu1 %v438_v43, %s746_s29 }
 0xf32   :  { %v441_v44 = vpop.permute.xlu1 %440 }
 0xf33   :  { %v443_v45 = vmul.f32 %v441_v44, %v424_v38  ;;  %v592_v38 = vld [vmem:[%s898_s3 + $0x18] sm:$0xff] }
 0xf34   :  { %614 = vmatpush.msra.mxu0 %v592_v38 }
 0xf35   :  { %445 = vrot.lane.b32.xlu2 %v443_v45, %s747_s30  ;;  %v669_v45 = vld [vmem:[%s899_s4] ss:$0 sm:$0xff] }
 0xf36   :  { %615 = vmatpush.msra.mxu0 %v591_v39 }
 0xf38   :  { %616 = vmatpush.msra.mxu0 %v590_v40 }
 0xf3a   :  { %617 = vmatpush.msra.mxu0 %v589_v41 }
 0xf8f   :  { %v446_v46 = vpop.permute.xlu2 %445 }
 0xf90   :  { %v448_v47 = vadd.f32 %v705_v42, %v446_v46 }
 0xf92   :  { %452 = vrot.lane.b32.xlu0 %v448_v47, %s744_s26 }
0x1004   :  { %v453_v48 = vpop.permute.xlu0 %452 }
0x1005   :  { %657 = vmatmul.msk.f32.vlgmr.msrb.gmra.mxu2 %vm29_vm4, %v453_v48 }
0x1088   :  { %v473_v49 = vpop.f32.mrf.mxu2 }
0x1089   :  { %v496_v50 = vadd.f32 %v473_v49, %v795_v6  ;;  %v476_v52 = vadd.f32 %v656_v51, %v473_v49 }
0x108b   :  { %498 = vrot.lane.b32.xlu1 %v496_v50, %s744_s26  ;;  %v658_v53 = vmul.f32 -1.442695, %v476_v52 }
0x108d   :  { %706 = vpow2.f32 %v658_v53 }
0x1093   :  { %v707_v54 = vpop.eup %706 }
0x1094   :  { %v480_v55 = vadd.f32 1.0, %v707_v54 }
0x1096   :  { %708 = vrcp.f32 %v480_v55  ;;  %v492_v61 = vand.u32 2147483648, %v480_v55  ;;  %vm486_vm11 = vweird.f32 %v480_v55  ;;  %v490_v62 = vand.u32 2147483647, %v480_v55 }
0x1098   :  { %v493_v0 = vor.u32 1.1754944e-38, %v492_v61  ;;  %vm491_vm13 = vcmp.eq.f32.partialorder %v490_v62, 8.507059e+37 }
0x109c   :  { %v709_v56 = vpop.eup %708 }
0x109d   :  { %v482_v57 = vmul.f32 %v709_v56, %v480_v55  ;;  %vm487_vm10 = vweird.f32 %v709_v56 }
0x109e   :  { %vm488_vm12 = vmor %vm486_vm11, %vm487_vm10 }
0x109f   :  { %v483_v58 = vsub.f32 1.0, %v482_v57 }
0x10a1   :  { %v484_v59 = vmul.f32 %v709_v56, %v483_v58 }
0x10a3   :  { %v485_v60 = vadd.f32 %v709_v56, %v484_v59 }
0x10a5   :  { %v489_v63 = vsel %vm488_vm12, %v709_v56, %v485_v60 }
0x10a6   :  { %v494_v2 = vsel %vm491_vm13, %v493_v0, %v489_v63 }
0x10fd   :  { %v499_v1 = vpop.permute.xlu1 %498 }
0x10fe   :  { %v501_v3 = vmul.f32 %v499_v1, %v494_v2 }
0x1100   :  { %503 = vrot.lane.b32.xlu2 %v501_v3, %s744_s26 }
0x115a   :  { %v504_v4 = vpop.permute.xlu2 %503 }
0x115b   :  { %v506_v5 = vadd.f32 %v656_v51, %v504_v4 }
0x115d   :  { %710 = vtanh.f32 %v506_v5 }
0x1163   :  { %v711_v7 = vpop.eup %710 }
0x1164   :  { %v508_v8 = vsub.f32 %v448_v47, %v711_v7 }
0x1166   :  { %510 = vrot.lane.b32.xlu0 %v508_v8, %s746_s29 }
0x11d8   :  { %v511_v9 = vpop.permute.xlu0 %510 }
0x11d9   :  { %v513_v10 = vmul.f32 %v511_v9, %v494_v2 }
0x11db   :  { %515 = vrot.lane.b32.xlu1 %v513_v10, %s747_s30 }
0x124d   :  { %v516_v11 = vpop.permute.xlu1 %515 }
0x124e   :  { %v518_v12 = vadd.f32 %v711_v7, %v516_v11 }
0x1250   :  { %522 = vrot.lane.b32.xlu2 %v518_v12, %s744_s26 }
0x12aa   :  { %v523_v13 = vpop.permute.xlu2 %522 }
0x12ab   :  { %660 = vmatmul.msk.f32.vlgmr.msrb.gmra.mxu3 %vm29_vm4, %v523_v13 }
0x132e   :  { %v543_v14 = vpop.f32.mrf.mxu3 }
0x132f   :  { %v566_v15 = vadd.f32 %v543_v14, %v795_v6  ;;  %v546_v17 = vadd.f32 %v659_v16, %v543_v14 }
0x1331   :  { %568 = vrot.lane.b32.xlu0 %v566_v15, %s744_s26  ;;  %v661_v18 = vmul.f32 -1.442695, %v546_v17 }
0x1333   :  { %712 = vpow2.f32 %v661_v18 }
0x1339   :  { %v713_v19 = vpop.eup %712 }
0x133a   :  { %v550_v20 = vadd.f32 1.0, %v713_v19 }
0x133c   :  { %714 = vrcp.f32 %v550_v20  ;;  %v562_v26 = vand.u32 2147483648, %v550_v20  ;;  %vm556_vm15 = vweird.f32 %v550_v20  ;;  %v560_v6 = vand.u32 2147483647, %v550_v20 }
0x133e   :  { %v563_v28 = vor.u32 1.1754944e-38, %v562_v26  ;;  %vm561_vm1 = vcmp.eq.f32.partialorder %v560_v6, 8.507059e+37 }
0x1342   :  { %v715_v21 = vpop.eup %714 }
0x1343   :  { %v552_v22 = vmul.f32 %v715_v21, %v550_v20  ;;  %vm557_vm14 = vweird.f32 %v715_v21 }
0x1344   :  { %vm558_vm0 = vmor %vm556_vm15, %vm557_vm14 }
0x1345   :  { %v553_v23 = vsub.f32 1.0, %v552_v22 }
0x1347   :  { %v554_v24 = vmul.f32 %v715_v21, %v553_v23 }
0x1349   :  { %v555_v25 = vadd.f32 %v715_v21, %v554_v24 }
0x134b   :  { %v559_v27 = vsel %vm558_vm0, %v715_v21, %v555_v25 }
0x134c   :  { %v564_v30 = vsel %vm561_vm1, %v563_v28, %v559_v27 }
0x13a3   :  { %v569_v29 = vpop.permute.xlu0 %568 }
0x13a4   :  { %v571_v31 = vmul.f32 %v569_v29, %v564_v30 }
0x13a6   :  { %573 = vrot.lane.b32.xlu1 %v571_v31, %s744_s26 }
0x1418   :  { %v574_v32 = vpop.permute.xlu1 %573 }
0x1419   :  { %v576_v33 = vadd.f32 %v659_v16, %v574_v32 }
0x141b   :  { %716 = vtanh.f32 %v576_v33 }
0x1421   :  { %v717_v34 = vpop.eup %716 }
0x1422   :  { %v578_v35 = vsub.f32 %v518_v12, %v717_v34 }
0x1424   :  { %580 = vrot.lane.b32.xlu2 %v578_v35, %s746_s29  ;;  %s629_s29 = sshll.u32 %s748_s2, 4  ;;  %s630_s29 = int_to_ptr.vmem [resolvable:$true] %s629_s29 }
0x147e   :  { %v581_v36 = vpop.permute.xlu2 %580 }
0x147f   :  { %v583_v37 = vmul.f32 %v581_v36, %v564_v30 }
0x1481   :  { %585 = vrot.lane.b32.xlu0 %v583_v37, %s747_s30 }
0x14f3   :  { %v586_v42 = vpop.permute.xlu0 %585 }
0x14f4   :  { %v588_v43 = vadd.f32 %v717_v34, %v586_v42 }
0x14f6   :  { %598 = vrot.lane.b32.xlu1 %v588_v43, %s744_s26 }
0x1568   :  { %v599_v44 = vpop.permute.xlu1 %598 }
0x1569   :  { %662 = vmatmul.msk.f32.vlgmr.msra.gmra.mxu0 %vm29_vm4, %v599_v44 }
0x15e6   :  { %v619_v46 = vpop.f32.mrf.mxu0 }
0x15e7   :  { %v620_v47 = vadd.f32 %v669_v45, %v619_v46 }
0x15e9   :  { %623 = vst.msk [vmem:[#allocation2] sm:$0x3] %vm622_vm2, %v620_v47 }
0x15ea   :  { %634 = dma.vmem_to_hbm [thread:$0]  %s630_s29, 32, %s632_s7, [#allocation3]  }
0x15eb   :  { %742 = dma.done.wait [#allocation3], 32  }
0x15ec   :  { %743 = vsyncadd [#allocation3], 4294967264 }
0x15ed   :  { %639 = vsyncpa [#allocation3], 1 }

</bundles_post_ra>
